<compile_context>
chip_gen: v7x
topology: tpu7x:2x2x1
jax: 0.10.0
libtpu: 0.0.40
codegen_flags: <defaults>
</compile_context>

<pallas_src>
import functools

import jax
import jax.numpy as jnp
from jax import lax
from jax.experimental import pallas as pl
from jax.experimental.pallas import tpu as pltpu


def _round_up(x, m):
    return ((x + m - 1) // m) * m


def _hw_params():
    """(VMEM byte budget, MXU row count) for the current TPU generation."""
    try:
        vmem_phys = int(pltpu.get_tpu_info().vmem_capacity_bytes)
    except Exception:
        vmem_phys = 64 * 1024 * 1024            # assume v7x-sized VMEM if unknown
    # v5e/v6e: 128 MiB physical -> 80 MiB budget; v7x: 64 MiB -> 40 MiB budget.
    budget = (80 if vmem_phys >= 100 * 2**20 else 40) * 2**20
    try:
        kind = jax.devices()[0].device_kind.lower()
    except Exception:
        kind = ""
    # v6e / v7x have 256-row MXUs; v5e and older are 128-row.
    mxu_rows = 128 if any(t in kind for t in ("v2", "v3", "v4", "v5")) else 256
    return budget, mxu_rows


def _plan(n_anchor, n_contrast, d, op_bytes, share):
    """Pick (ta, tc, a_pad, c_pad, resident, vmem_limit) from a VMEM budget."""
    budget, mxu_rows = _hw_params()
    fixed = 2 * 2**20                            # labels / out / scratch / slack

    def usage(tc_, resident_):
        anchor = 2 * mxu_rows * d * op_bytes                   # double-buffered
        inter = 6 * mxu_rows * tc_ * 4                          # f32 temporaries
        if resident_:
            c_pad_ = _round_up(n_contrast, tc_)
            contrast = 2 * c_pad_ * d * op_bytes + 2 * 8 * c_pad_ * 4
        else:
            contrast = 3 * tc_ * d * op_bytes + 3 * 8 * tc_ * 4  # Buffered(3)
        return fixed + anchor + inter + contrast

    # Contrast tile: lane-dense, as big as the budget allows (multiple of 128).
    tc = min(_round_up(n_contrast, 128), 2048)
    while tc > 128 and usage(tc, False) > budget:
        tc = max(128, _round_up(tc // 2, 128))
    resident = usage(tc, True) <= budget
    c_pad = _round_up(n_contrast, tc)

    if share:
        # Anchor and contrast are the same padded matrix -> a_pad must == c_pad.
        a_pad = c_pad
        ta = min(a_pad, mxu_rows)
        for cand in (mxu_rows, 128, 64, 32, 16, 8):
            if cand <= mxu_rows and a_pad % cand == 0 and a_pad // cand >= 2:
                ta = cand                        # >=2 anchor tiles (v7x megacore)
                break
    else:
        if n_anchor <= mxu_rows:
            ta = min(mxu_rows, max(8, int(pl.next_power_of_2(max(n_anchor, 1)))))
        else:
            ta = mxu_rows
        if _round_up(n_anchor, ta) // ta < 2 and ta > 8:
            ta = max(8, ta // 2)                 # >=2 anchor tiles when possible
        a_pad = _round_up(n_anchor, ta)
    # TODO(synk): for very large d, add a K-tiling grid axis with a (ta, tc)
    # f32 VMEM accumulator instead of shrinking tc.
    return ta, tc, a_pad, c_pad, resident, budget


def _stream_spec(block_shape, index_map):
    """Streaming contrast BlockSpec; Buffered(3) covers the j-wraparound bubble."""
    try:
        return pl.BlockSpec(block_shape, index_map, pipeline_mode=pl.Buffered(3))
    except TypeError:                            # older BlockSpec signature
        return pl.BlockSpec(block_shape, index_map)


def _supcon_kernel(scale_ref, row_lab_ref, col_lab_ref, a_ref, c_ref,
                   out_ref, m_sc, s_sc, pa_sc, cnt_sc,
                   *, n_anchor, n_contrast, ta, tc, resident, op_dtype):
    i = pl.program_id(0)            # anchor tile   (parallel)
    j = pl.program_id(1)            # contrast tile (reduction, last axis)
    nj = pl.num_programs(1)

    @pl.when(j == 0)
    def _init():
        m_sc[...] = jnp.full_like(m_sc, -jnp.inf)
        s_sc[...] = jnp.zeros_like(s_sc)
        pa_sc[...] = jnp.zeros_like(pa_sc)
        cnt_sc[...] = jnp.zeros_like(cnt_sc)

    inv_temp = scale_ref[0]          # 1 / temperature          (SMEM scalar)
    loss_scale = scale_ref[1]        # temperature / base_temp  (SMEM scalar)

    # Fold 1/temperature into the small (ta, d) anchor tile (not the (ta, tc)
    # logits tile) and hand the MXU op_dtype (bf16 by default) operands.
    a = (a_ref[...].astype(jnp.float32) * inv_temp).astype(op_dtype)

    if resident:
        off = pl.multiple_of(j * tc, tc)
        c = c_ref[pl.ds(off, tc), :]             # slice of VMEM-resident matrix
        col_lab = col_lab_ref[:, pl.ds(off, tc)]
    else:
        c = c_ref[...]
        col_lab = col_lab_ref[...]

    # anchor . contrast^T / temperature  -> (ta, tc) f32
    adc = lax.dot_general(a, c, (((1,), (1,)), ((), ())),
                          preferred_element_type=jnp.float32)

    row_ids = i * ta + lax.broadcasted_iota(jnp.int32, (ta, tc), 0)
    col_ids = j * tc + lax.broadcasted_iota(jnp.int32, (ta, tc), 1)
    valid_col = col_ids < n_contrast
    # logits mask (no self-contrast, no padded columns) as an f32 multiplier,
    # positive mask = same label AND allowed by the logits mask.
    lm_f = jnp.logical_and(row_ids != col_ids, valid_col).astype(jnp.float32)
    pos_f = jnp.where(row_lab_ref[...] == col_lab, lm_f, 0.0)

    # online max over valid columns (self included, matching torch)
    tile_max = jnp.max(jnp.where(valid_col, adc, -jnp.inf), axis=-1, keepdims=True)
    m_prev = m_sc[...]
    m_new = jnp.maximum(m_prev, tile_max)
    alpha = jnp.exp(m_prev - m_new)

    e = jnp.exp(adc - m_new) * lm_f
    s_sc[...] = alpha * s_sc[...] + jnp.sum(e, axis=-1, keepdims=True)
    # accumulate UNshifted positive logits + counts (max correction at the end)
    pa_sc[...] += jnp.sum(pos_f * adc, axis=-1, keepdims=True)
    cnt_sc[...] += jnp.sum(pos_f, axis=-1, keepdims=True)
    m_sc[...] = m_new

    @pl.when(j == nj - 1)
    def _finalize():
        cnt = cnt_sc[...]
        cnt_safe = jnp.maximum(cnt, 1.0)
        # mean_log_prob_pos = mean_pos(adc) - (m + log sum_lm exp(adc - m))
        mlpp = pa_sc[...] / cnt_safe - m_sc[...] - jnp.log(s_sc[...])
        row_valid = (i * ta + lax.broadcasted_iota(jnp.int32, (ta, 1), 0)) < n_anchor
        out_ref[...] = jnp.where(jnp.logical_and(row_valid, cnt > 0.0),
                                 -loss_scale * mlpp, 0.0)


def supcon_loss(features, labels=None, mask=None, temperature=0.07,
                contrast_mode="all", base_temperature=0.07,
                mxu_dtype=jnp.bfloat16):
    """SupConLoss forward.  features: (bsz, n_views, ...); labels: (bsz,)."""
    if mask is not None:
        # TODO(synk): arbitrary asymmetric bsz x bsz contrast masks unsupported.
        raise NotImplementedError("explicit `mask` is not supported; use labels")
    if features.ndim < 3:
        raise ValueError("`features` needs to be [bsz, n_views, ...]")
    bsz, n_views = features.shape[0], features.shape[1]
    features = features.reshape(bsz, n_views, -1)
    d = features.shape[-1]

    # torch.cat(torch.unbind(features, dim=1), dim=0): view-major ordering
    contrast = jnp.transpose(features, (1, 0, 2)).reshape(n_views * bsz, d)

    if labels is None:
        labels = jnp.arange(bsz, dtype=jnp.int32)   # SimCLR: eye(bsz) mask
    labels = jnp.asarray(labels).reshape(-1).astype(jnp.int32)
    if labels.shape[0] != bsz:
        raise ValueError("Num of labels does not match num of features")
    col_labels = jnp.tile(labels, n_views)

    if contrast_mode == "one":
        anchor = features[:, 0]
        row_labels = labels
        share = False
    elif contrast_mode == "all":
        anchor = contrast
        row_labels = col_labels
        share = True
    else:
        raise ValueError(f"Unknown mode: {contrast_mode}")

    n_anchor = anchor.shape[0]
    n_contrast = contrast.shape[0]
    op_dtype = jax.dtypes.canonicalize_dtype(mxu_dtype)
    op_bytes = op_dtype.itemsize

    ta, tc, a_pad, c_pad, resident, vmem_limit = _plan(
        n_anchor, n_contrast, d, op_bytes, share)

    contrast_p = jnp.zeros((c_pad, d), op_dtype).at[:n_contrast].set(
        contrast.astype(op_dtype))
    if share:
        anchor_p = contrast_p            # 'all': same padded HBM buffer for both
    else:
        anchor_p = jnp.zeros((a_pad, d), op_dtype).at[:n_anchor].set(
            anchor.astype(op_dtype))
    row_lab_p = jnp.full((a_pad, 1), -1, jnp.int32).at[:n_anchor, 0].set(row_labels)
    col_lab_p = jnp.full((1, c_pad), -2, jnp.int32).at[0, :n_contrast].set(col_labels)
    scalars = jnp.array([1.0 / temperature, temperature / base_temperature],
                        jnp.float32)

    if resident:
        # Whole contrast matrix + col labels stay in VMEM for all grid steps.
        col_lab_spec = pl.BlockSpec((1, c_pad), lambda i, j: (0, 0))
        contrast_spec = pl.BlockSpec((c_pad, d), lambda i, j: (0, 0))
    else:
        col_lab_spec = pl.BlockSpec((1, tc), lambda i, j: (0, j))
        contrast_spec = _stream_spec((tc, d), lambda i, j: (j, 0))

    kernel = functools.partial(
        _supcon_kernel, n_anchor=n_anchor, n_contrast=n_contrast,
        ta=ta, tc=tc, resident=resident, op_dtype=op_dtype)

    per_anchor = pl.pallas_call(
        kernel,
        out_shape=jax.ShapeDtypeStruct((a_pad, 1), jnp.float32),
        grid_spec=pltpu.PrefetchScalarGridSpec(
            num_scalar_prefetch=0,
            grid=(a_pad // ta, c_pad // tc),
            in_specs=[
                pl.BlockSpec(memory_space=pltpu.MemorySpace.SMEM),  # temp scalars
                pl.BlockSpec((ta, 1), lambda i, j: (i, 0)),         # row labels
                col_lab_spec,                                       # col labels
                pl.BlockSpec((ta, d), lambda i, j: (i, 0)),         # anchor tile
                contrast_spec,                                      # contrast
            ],
            out_specs=pl.BlockSpec((ta, 1), lambda i, j: (i, 0)),
            scratch_shapes=[pltpu.VMEM((ta, 1), jnp.float32)] * 4,
        ),
        compiler_params=pltpu.CompilerParams(
            dimension_semantics=("parallel", "arbitrary"),
            vmem_limit_bytes=int(vmem_limit),
        ),
    )(scalars, row_lab_p, col_lab_p, anchor_p, contrast_p)

    # mean over all anchors (= loss.view(anchor_count, bsz).mean() in torch)
    return jnp.sum(per_anchor) / n_anchor


def _supcon_ref(features, labels, temperature, base_temperature,
                contrast_mode="all"):
    """Plain-JAX reference, mirroring the torch module line by line."""
    bsz, n_views = features.shape[0], features.shape[1]
    feats = features.reshape(bsz, n_views, -1).astype(jnp.float32)
    contrast = jnp.transpose(feats, (1, 0, 2)).reshape(n_views * bsz, -1)
    if labels is None:
        mask = jnp.eye(bsz, dtype=jnp.float32)
    else:
        lab = jnp.asarray(labels).reshape(-1, 1)
        mask = (lab == lab.T).astype(jnp.float32)
    if contrast_mode == "one":
        anchor = feats[:, 0]
        anchor_count = 1
    else:
        anchor = contrast
        anchor_count = n_views
    adc = (anchor @ contrast.T) / temperature
    logits = adc - jnp.max(adc, axis=1, keepdims=True)
    mask_full = jnp.tile(mask, (anchor_count, n_views))
    na, nc = mask_full.shape
    logits_mask = (jnp.arange(na)[:, None] != jnp.arange(nc)[None, :]).astype(
        jnp.float32)
    mask_full = mask_full * logits_mask
    exp_logits = jnp.exp(logits) * logits_mask
    log_prob = logits - jnp.log(jnp.sum(exp_logits, axis=1, keepdims=True))
    mlpp = jnp.sum(mask_full * log_prob, axis=1) / jnp.sum(mask_full, axis=1)
    loss = -(temperature / base_temperature) * mlpp
    return jnp.mean(loss)


if __name__ == "__main__":
    key = jax.random.PRNGKey(0)
    bsz, n_views, d = 8, 2, 32
    feats = jax.random.normal(key, (bsz, n_views, d), dtype=jnp.float32)
    feats = feats / jnp.linalg.norm(feats, axis=-1, keepdims=True)
    labels = jnp.array([0, 1, 2, 3, 0, 1, 2, 3], dtype=jnp.int32)

    # Exact check (f32 MXU operands): supervised 'all', SimCLR, and 'one' paths.
    for lab in (labels, None):
        got = supcon_loss(feats, labels=lab, mxu_dtype=jnp.float32)
        jax.block_until_ready(got)
        want = _supcon_ref(feats, lab, 0.07, 0.07, "all")
        assert jnp.allclose(got, want, rtol=1e-4, atol=1e-4), (lab is None, got, want)

    got_one = supcon_loss(feats, labels=labels, contrast_mode="one",
                          mxu_dtype=jnp.float32)
    jax.block_until_ready(got_one)
    want_one = _supcon_ref(feats, labels, 0.07, 0.07, "one")
    assert jnp.allclose(got_one, want_one, rtol=1e-4, atol=1e-4), (got_one, want_one)

    # Default fast path: bf16 MXU operands (looser tolerance vs f32 reference).
    got_bf16 = supcon_loss(feats, labels=labels)
    jax.block_until_ready(got_bf16)
    want_all = _supcon_ref(feats, labels, 0.07, 0.07, "all")
    assert jnp.allclose(got_bf16, want_all, rtol=5e-2, atol=5e-2), (got_bf16, want_all)

    print("KERNEL_OK")
</pallas_src>

<mosaic_0001>
module attributes {stable_mosaic.version = 11 : i64} {
  func.func @_supcon_kernel(%arg0: i32, %arg1: i32, %arg2: memref<2xf32, #tpu.memory_space<smem>>, %arg3: memref<64x1xi32, #tpu.memory_space<vmem>>, %arg4: memref<1x128xi32, #tpu.memory_space<vmem>>, %arg5: memref<64x32xf32, #tpu.memory_space<vmem>>, %arg6: memref<128x32xf32, #tpu.memory_space<vmem>>, %arg7: memref<64x1xf32, #tpu.memory_space<vmem>>, %arg8: memref<64x1xf32, #tpu.memory_space<vmem>>, %arg9: memref<64x1xf32, #tpu.memory_space<vmem>>, %arg10: memref<64x1xf32, #tpu.memory_space<vmem>>, %arg11: memref<64x1xf32, #tpu.memory_space<vmem>>) attributes {dimension_semantics = [#tpu.dimension_semantics<parallel>, #tpu.dimension_semantics<arbitrary>], iteration_bounds = array<i64: 2, 1>, scalar_prefetch = 0 : i64, scratch_operands = 4 : i64, tpu.core_type = #tpu.core_type<tc>, window_params = [{transform_indices = @transform_0, window_bounds = array<i64: 2>}, {transform_indices = @transform_1, window_bounds = array<i64: 64, 1>}, {pipeline_mode = #tpu.pipeline_mode<synchronous>, transform_indices = @transform_2, window_bounds = array<i64: 1, 128>}, {transform_indices = @transform_3, window_bounds = array<i64: 64, 32>}, {pipeline_mode = #tpu.pipeline_mode<synchronous>, transform_indices = @transform_4, window_bounds = array<i64: 128, 32>}, {transform_indices = @transform_5, window_bounds = array<i64: 64, 1>}]} {
    %c0_i32 = arith.constant 0 : i32
    %0 = arith.cmpi eq, %arg1, %c0_i32 : i32
    %1 = arith.extui %0 : i1 to i32
    %c0_i32_0 = arith.constant 0 : i32
    %2 = arith.cmpi ne, %1, %c0_i32_0 : i32
    scf.if %2 {
      %cst_32 = arith.constant 0xFF800000 : f32
      %68 = vector.broadcast %cst_32 : f32 to vector<64x1xf32>
      %c0_33 = arith.constant 0 : index
      %c0_34 = arith.constant 0 : index
      %69 = vector.load %arg8[%c0_33, %c0_34] : memref<64x1xf32, #tpu.memory_space<vmem>>, vector<64x1xf32>
      tpu.vector_store %arg8[%c0_33, %c0_34], %68 {strides = array<i32>} : memref<64x1xf32, #tpu.memory_space<vmem>>, vector<64x1xf32>,
      %cst_35 = arith.constant 0.000000e+00 : f32
      %70 = vector.broadcast %cst_35 : f32 to vector<64x1xf32>
      %c0_36 = arith.constant 0 : index
      %c0_37 = arith.constant 0 : index
      %71 = vector.load %arg9[%c0_36, %c0_37] : memref<64x1xf32, #tpu.memory_space<vmem>>, vector<64x1xf32>
      tpu.vector_store %arg9[%c0_36, %c0_37], %70 {strides = array<i32>} : memref<64x1xf32, #tpu.memory_space<vmem>>, vector<64x1xf32>,
      %cst_38 = arith.constant 0.000000e+00 : f32
      %72 = vector.broadcast %cst_38 : f32 to vector<64x1xf32>
      %c0_39 = arith.constant 0 : index
      %c0_40 = arith.constant 0 : index
      %73 = vector.load %arg10[%c0_39, %c0_40] : memref<64x1xf32, #tpu.memory_space<vmem>>, vector<64x1xf32>
      tpu.vector_store %arg10[%c0_39, %c0_40], %72 {strides = array<i32>} : memref<64x1xf32, #tpu.memory_space<vmem>>, vector<64x1xf32>,
      %cst_41 = arith.constant 0.000000e+00 : f32
      %74 = vector.broadcast %cst_41 : f32 to vector<64x1xf32>
      %c0_42 = arith.constant 0 : index
      %c0_43 = arith.constant 0 : index
      %75 = vector.load %arg11[%c0_42, %c0_43] : memref<64x1xf32, #tpu.memory_space<vmem>>, vector<64x1xf32>
      tpu.vector_store %arg11[%c0_42, %c0_43], %74 {strides = array<i32>} : memref<64x1xf32, #tpu.memory_space<vmem>>, vector<64x1xf32>,
    } else {
    }
    %c0 = arith.constant 0 : index
    %3 = memref.load %arg2[%c0] : memref<2xf32, #tpu.memory_space<smem>>
    %c1 = arith.constant 1 : index
    %4 = memref.load %arg2[%c1] : memref<2xf32, #tpu.memory_space<smem>>
    %c0_1 = arith.constant 0 : index
    %c0_2 = arith.constant 0 : index
    %5 = vector.load %arg5[%c0_1, %c0_2] : memref<64x32xf32, #tpu.memory_space<vmem>>, vector<64x32xf32>
    %6 = vector.broadcast %3 : f32 to vector<64x32xf32>
    %7 = arith.mulf %5, %6 : vector<64x32xf32>
    %c128_i32 = arith.constant 128 : i32
    %8 = arith.muli %arg1, %c128_i32 : i32
    %9 = tpu.assume_multiple %8, 128 : i32
    %10 = arith.index_cast %9 : i32 to index
    %c0_3 = arith.constant 0 : index
    %11 = vector.load %arg6[%10, %c0_3] : memref<128x32xf32, #tpu.memory_space<vmem>>, vector<128x32xf32>
    %c0_4 = arith.constant 0 : index
    %12 = arith.index_cast %9 : i32 to index
    %13 = vector.load %arg4[%c0_4, %12] : memref<1x128xi32, #tpu.memory_space<vmem>>, vector<1x128xi32>
    %cst = arith.constant dense<0.000000e+00> : vector<64x128xf32>
    %14 = tpu.matmul %7, %11, %cst {dimension_numbers = #tpu.dot_dimension_numbers<[1], [1], [0], [0], [0, 0, 1, 0], [], []>} : vector<64x32xf32>, vector<128x32xf32>, vector<64x128xf32> -> vector<64x128xf32>
    %c64_i32 = arith.constant 64 : i32
    %15 = arith.muli %arg0, %c64_i32 : i32
    %16 = tpu.iota {dimensions = array<i32: 0>} : vector<64x128xi32>
    %17 = vector.broadcast %15 : i32 to vector<64x128xi32>
    %18 = arith.addi %17, %16 : vector<64x128xi32>
    %c128_i32_5 = arith.constant 128 : i32
    %19 = arith.muli %arg1, %c128_i32_5 : i32
    %20 = tpu.iota {dimensions = array<i32: 1>} : vector<64x128xi32>
    %21 = vector.broadcast %19 : i32 to vector<64x128xi32>
    %22 = arith.addi %21, %20 : vector<64x128xi32>
    %c16_i32 = arith.constant 16 : i32
    %23 = vector.broadcast %c16_i32 : i32 to vector<64x128xi32>
    %24 = arith.cmpi slt, %22, %23 : vector<64x128xi32>
    %25 = arith.cmpi ne, %18, %22 : vector<64x128xi32>
    %26 = arith.andi %25, %24 : vector<64x128xi1>
    %27 = arith.extui %26 : vector<64x128xi1> to vector<64x128xi32>
    %28 = arith.sitofp %27 : vector<64x128xi32> to vector<64x128xf32>
    %c0_6 = arith.constant 0 : index
    %c0_7 = arith.constant 0 : index
    %29 = vector.load %arg3[%c0_6, %c0_7] : memref<64x1xi32, #tpu.memory_space<vmem>>, vector<64x1xi32>
    %30 = vector.broadcast %29 : vector<64x1xi32> to vector<64x128xi32>
    %31 = vector.broadcast %13 : vector<1x128xi32> to vector<64x128xi32>
    %32 = arith.cmpi eq, %30, %31 : vector<64x128xi32>
    %cst_8 = arith.constant 0.000000e+00 : f32
    %33 = vector.broadcast %cst_8 : f32 to vector<64x128xf32>
    %34 = arith.select %32, %28, %33 : vector<64x128xi1>, vector<64x128xf32>
    %cst_9 = arith.constant 0xFF800000 : f32
    %35 = vector.broadcast %cst_9 : f32 to vector<64x128xf32>
    %36 = arith.select %24, %14, %35 : vector<64x128xi1>, vector<64x128xf32>
    %cst_10 = arith.constant dense<0xFF800000> : vector<64xf32>
    %37 = vector.multi_reduction <maximumf>, %36, %cst_10 [1] : vector<64x128xf32> to vector<64xf32>
    %38 = vector.shape_cast %37 : vector<64xf32> to vector<64x1xf32>
    %c0_11 = arith.constant 0 : index
    %c0_12 = arith.constant 0 : index
    %39 = vector.load %arg8[%c0_11, %c0_12] : memref<64x1xf32, #tpu.memory_space<vmem>>, vector<64x1xf32>
    %40 = arith.maximumf %39, %38 : vector<64x1xf32>
    %41 = arith.subf %39, %40 : vector<64x1xf32>
    %42 = math.exp %41 : vector<64x1xf32>
    %43 = vector.broadcast %40 : vector<64x1xf32> to vector<64x128xf32>
    %44 = arith.subf %14, %43 : vector<64x128xf32>
    %45 = math.exp %44 : vector<64x128xf32>
    %46 = arith.mulf %45, %28 : vector<64x128xf32>
    %c0_13 = arith.constant 0 : index
    %c0_14 = arith.constant 0 : index
    %47 = vector.load %arg9[%c0_13, %c0_14] : memref<64x1xf32, #tpu.memory_space<vmem>>, vector<64x1xf32>
    %48 = arith.mulf %42, %47 : vector<64x1xf32>
    %cst_15 = arith.constant dense<0.000000e+00> : vector<64xf32>
    %49 = vector.multi_reduction <add>, %46, %cst_15 [1] : vector<64x128xf32> to vector<64xf32>
    %50 = vector.shape_cast %49 : vector<64xf32> to vector<64x1xf32>
    %51 = arith.addf %48, %50 : vector<64x1xf32>
    %c0_16 = arith.constant 0 : index
    %c0_17 = arith.constant 0 : index
    %52 = vector.load %arg9[%c0_16, %c0_17] : memref<64x1xf32, #tpu.memory_space<vmem>>, vector<64x1xf32>
    tpu.vector_store %arg9[%c0_16, %c0_17], %51 {strides = array<i32>} : memref<64x1xf32, #tpu.memory_space<vmem>>, vector<64x1xf32>,
    %c0_18 = arith.constant 0 : index
    %c0_19 = arith.constant 0 : index
    %53 = vector.load %arg10[%c0_18, %c0_19] : memref<64x1xf32, #tpu.memory_space<vmem>>, vector<64x1xf32>
    %54 = arith.mulf %34, %14 : vector<64x128xf32>
    %cst_20 = arith.constant dense<0.000000e+00> : vector<64xf32>
    %55 = vector.multi_reduction <add>, %54, %cst_20 [1] : vector<64x128xf32> to vector<64xf32>
    %56 = vector.shape_cast %55 : vector<64xf32> to vector<64x1xf32>
    %57 = arith.addf %53, %56 : vector<64x1xf32>
    %c0_21 = arith.constant 0 : index
    %c0_22 = arith.constant 0 : index
    %58 = vector.load %arg10[%c0_21, %c0_22] : memref<64x1xf32, #tpu.memory_space<vmem>>, vector<64x1xf32>
    tpu.vector_store %arg10[%c0_21, %c0_22], %57 {strides = array<i32>} : memref<64x1xf32, #tpu.memory_space<vmem>>, vector<64x1xf32>,
    %c0_23 = arith.constant 0 : index
    %c0_24 = arith.constant 0 : index
    %59 = vector.load %arg11[%c0_23, %c0_24] : memref<64x1xf32, #tpu.memory_space<vmem>>, vector<64x1xf32>
    %cst_25 = arith.constant dense<0.000000e+00> : vector<64xf32>
    %60 = vector.multi_reduction <add>, %34, %cst_25 [1] : vector<64x128xf32> to vector<64xf32>
    %61 = vector.shape_cast %60 : vector<64xf32> to vector<64x1xf32>
    %62 = arith.addf %59, %61 : vector<64x1xf32>
    %c0_26 = arith.constant 0 : index
    %c0_27 = arith.constant 0 : index
    %63 = vector.load %arg11[%c0_26, %c0_27] : memref<64x1xf32, #tpu.memory_space<vmem>>, vector<64x1xf32>
    tpu.vector_store %arg11[%c0_26, %c0_27], %62 {strides = array<i32>} : memref<64x1xf32, #tpu.memory_space<vmem>>, vector<64x1xf32>,
    %c0_28 = arith.constant 0 : index
    %c0_29 = arith.constant 0 : index
    %64 = vector.load %arg8[%c0_28, %c0_29] : memref<64x1xf32, #tpu.memory_space<vmem>>, vector<64x1xf32>
    tpu.vector_store %arg8[%c0_28, %c0_29], %40 {strides = array<i32>} : memref<64x1xf32, #tpu.memory_space<vmem>>, vector<64x1xf32>,
    %c0_i32_30 = arith.constant 0 : i32
    %65 = arith.cmpi eq, %arg1, %c0_i32_30 : i32
    %66 = arith.extui %65 : i1 to i32
    %c0_i32_31 = arith.constant 0 : i32
    %67 = arith.cmpi ne, %66, %c0_i32_31 : i32
    scf.if %67 {
      %c0_32 = arith.constant 0 : index
      %c0_33 = arith.constant 0 : index
      %68 = vector.load %arg11[%c0_32, %c0_33] : memref<64x1xf32, #tpu.memory_space<vmem>>, vector<64x1xf32>
      %cst_34 = arith.constant 1.000000e+00 : f32
      %69 = vector.broadcast %cst_34 : f32 to vector<64x1xf32>
      %70 = arith.maximumf %68, %69 : vector<64x1xf32>
      %c0_35 = arith.constant 0 : index
      %c0_36 = arith.constant 0 : index
      %71 = vector.load %arg10[%c0_35, %c0_36] : memref<64x1xf32, #tpu.memory_space<vmem>>, vector<64x1xf32>
      %72 = arith.divf %71, %70 : vector<64x1xf32>
      %c0_37 = arith.constant 0 : index
      %c0_38 = arith.constant 0 : index
      %73 = vector.load %arg8[%c0_37, %c0_38] : memref<64x1xf32, #tpu.memory_space<vmem>>, vector<64x1xf32>
      %74 = arith.subf %72, %73 : vector<64x1xf32>
      %c0_39 = arith.constant 0 : index
      %c0_40 = arith.constant 0 : index
      %75 = vector.load %arg9[%c0_39, %c0_40] : memref<64x1xf32, #tpu.memory_space<vmem>>, vector<64x1xf32>
      %76 = math.log %75 : vector<64x1xf32>
      %77 = arith.subf %74, %76 : vector<64x1xf32>
      %c64_i32_41 = arith.constant 64 : i32
      %78 = arith.muli %arg0, %c64_i32_41 : i32
      %79 = tpu.iota {dimensions = array<i32: 0>} : vector<64x1xi32>
      %80 = vector.broadcast %78 : i32 to vector<64x1xi32>
      %81 = arith.addi %80, %79 : vector<64x1xi32>
      %c16_i32_42 = arith.constant 16 : i32
      %82 = vector.broadcast %c16_i32_42 : i32 to vector<64x1xi32>
      %83 = arith.cmpi slt, %81, %82 : vector<64x1xi32>
      %cst_43 = arith.constant 0.000000e+00 : f32
      %84 = vector.broadcast %cst_43 : f32 to vector<64x1xf32>
      %85 = arith.cmpf ogt, %68, %84 : vector<64x1xf32>
      %86 = arith.andi %83, %85 : vector<64x1xi1>
      %cst_44 = arith.constant 0.000000e+00 : f32
      %87 = arith.subf %cst_44, %4 : f32
      %88 = vector.broadcast %87 : f32 to vector<64x1xf32>
      %89 = arith.mulf %88, %77 : vector<64x1xf32>
      %cst_45 = arith.constant 0.000000e+00 : f32
      %90 = vector.broadcast %cst_45 : f32 to vector<64x1xf32>
      %91 = arith.select %86, %89, %90 : vector<64x1xi1>, vector<64x1xf32>
      %c0_46 = arith.constant 0 : index
      %c0_47 = arith.constant 0 : index
      %92 = vector.load %arg7[%c0_46, %c0_47] : memref<64x1xf32, #tpu.memory_space<vmem>>, vector<64x1xf32>
      tpu.vector_store %arg7[%c0_46, %c0_47], %91 {strides = array<i32>} : memref<64x1xf32, #tpu.memory_space<vmem>>, vector<64x1xf32>,
    } else {
    }
    return
  }
  func.func @transform_0(%arg0: i32, %arg1: i32) -> i32 {
    %c0_i32 = arith.constant 0 : i32
    %c0_i32_0 = arith.constant 0 : i32
    return %c0_i32 : i32
  }
  func.func @transform_1(%arg0: i32, %arg1: i32) -> (i32, i32) {
    %c0_i32 = arith.constant 0 : i32
    %c0_i32_0 = arith.constant 0 : i32
    return %arg0, %c0_i32 : i32, i32
  }
  func.func @transform_2(%arg0: i32, %arg1: i32) -> (i32, i32) {
    %c0_i32 = arith.constant 0 : i32
    %c0_i32_0 = arith.constant 0 : i32
    %c0_i32_1 = arith.constant 0 : i32
    return %c0_i32, %c0_i32_0 : i32, i32
  }
  func.func @transform_3(%arg0: i32, %arg1: i32) -> (i32, i32) {
    %c0_i32 = arith.constant 0 : i32
    %c0_i32_0 = arith.constant 0 : i32
    return %arg0, %c0_i32 : i32, i32
  }
  func.func @transform_4(%arg0: i32, %arg1: i32) -> (i32, i32) {
    %c0_i32 = arith.constant 0 : i32
    %c0_i32_0 = arith.constant 0 : i32
    %c0_i32_1 = arith.constant 0 : i32
    return %c0_i32, %c0_i32_0 : i32, i32
  }
  func.func @transform_5(%arg0: i32, %arg1: i32) -> (i32, i32) {
    %c0_i32 = arith.constant 0 : i32
    %c0_i32_0 = arith.constant 0 : i32
    return %arg0, %c0_i32 : i32, i32
  }
}

</mosaic_0001>

<bundles_post_ra>
// kernel: tpu_custom_call.1
= control target key start
LH: loop header
LB: loop body
LE: loop exit
PB: predicated region body
PF: predicated region fallthrough
CT: control target
= control target key end

     0   :  { %10 = vsyncpa [#allocation7], 0  ;;  %s1517_s18 = smov 0   ;;  %s1519_s19 = smov 0   ;;  %s2174_s0 = inlined_call_operand.vmem [shape: f32[2], index: 0, kind: input, shape index: {}]   ;;  %s2175_s1 = inlined_call_operand.vmem [shape: s32[128,1], index: 1, kind: input, shape index: {}]   ;;  %s2176_s2 = inlined_call_operand.vmem [shape: s32[1,128], index: 2, kind: input, shape index: {}]   ;;  %s2177_s3 = inlined_call_operand.vmem [shape: f32[128,32], index: 3, kind: input, shape index: {}]   ;;  %s2178_s4 = inlined_call_operand.vmem [shape: f32[128,32], index: 4, kind: input, shape index: {}]   ;;  %s2179_s5 = inlined_call_operand.vmem [shape: f32[128,1], index: 5, kind: output, shape index: {}]  }
   0x1   :  { %s1521_s20 = smov 0  }
   0x2 LB: > { %s1154_s21 = sadd.s32 4294967295, %s1481_s20   ;;  %s28_s22 = sadd.s32 1, %s1477_s19  ;;  %s1481_s20 = sphi %s1521_s20, %s16_s20   ;;  %s1477_s19 = sphi %s1519_s19, %s2186_s19   ;;  %s1473_s18 = sphi %s1517_s18, %s2185_s18  }
   0x3   : > { %p30_p0 = scmp.ge.s32.totalorder %s28_s22, 2  ;;  %p1156_p1 = scmp.ge.s32.totalorder %s1481_s20, 1 }
   0x4   : > { %p174_p2 = scmp.lt.s32.totalorder %s1481_s20, 3  ;;  %p1542_p4 = scmp.eq.s32.totalorder %s1154_s21, 0 }
   0x5   : > { %s2188_s22 = smov (%p30_p0, %s28_s22), 0  ;;  %s187_s27 = sshll.u32 %s2174_s0, 4  ;;  %s188_s27 = int_to_ptr.vmem [resolvable:$true] %s187_s27 }
   0x6   : > { %p1538_p3 = pnand %p1156_p1, %p174_p2  ;;  %s1440_s28 = scalar_lea.vmem %s188_s27, 16 }
   0x7   : > { %p1441_p7 = scmp.ne.s32.totalorder %s188_s27, %s1440_s28  ;;  %p1448_p11 = scmp.lt.s32.totalorder %s188_s27, %s188_s27 }
   0x8   : > { %p1340_p5 = pneg %p1538_p3  ;;  %p1449_p12 = scmp.lt.s32.totalorder %s1440_s28, %s1440_s28 }
   0xa   : > { %p1341_p6 = pnand %p1542_p4, %p1340_p5  ;;  %p1450_p13 = por %p1449_p12, %p1448_p11 }
   0xc   : > { %p1442_p8 = pneg %p1341_p6 }
   0xe   : > { %p1443_p9 = pnand %p1442_p8, %p1441_p7 }
  0x10   : > { %p1444_p10 = pneg %p1443_p9 }
  0x12   : > { %p1451_p0 = pnand %p1450_p13, %p1444_p10 }
  0x14   : > { %1454 = shalt.err (!%p1451_p0)
}
  0x15   : > { %s1483_s29 = smov [#allocation6]   ;;  %224 = sbr.rel (%p1538_p3) target bundleno = 815 (0x32f), region = 40 }
  0x16   : > { %1343 = dma.vmem_to_smem (!%p1341_p6), %s188_s27, 16, %s1483_s29, [#allocation7]  }
  0x1c   : > { %1468 = dma.done.wait (%p1542_p4), [#allocation7], 16  }
  0x1d   : > { %1470 = vsyncadd (%p1542_p4), [#allocation7], 4294967280 }
  0x1e   : > { %230 = sfence }
  0x1f   : > { %v334_v0 = vld [vmem:[%s2178_s4] sm:$0xff]  ;;  %v335_v1 = vld [vmem:[%s2178_s4 + $0x8] sm:$0xff]  ;;  %vm354_vm0 = vcmask 261120   ;;  %v336_v2 = vld [vmem:[%s2178_s4 + $0x10] sm:$0xff]  ;;  %s1161_s11 = sshll.u32 %s1473_s18, 3  ;;  %s313_s14 = sld [smem:[#allocation6]]  ;;  %v533_v44 = vlaneseq }
  0x20   : > { %v1272_v3 = vpack.c.bf16 %v335_v1, %v334_v0  ;;  %vm1571_vm1 = vmpackc.low %vm354_vm0, %vm354_vm0  ;;  %v337_v5 = vld [vmem:[%s2178_s4 + $0x18] sm:$0xff]  ;;  %p259_p1 = scmp.lt.s32.totalorder %s1161_s11, 15  ;;  %v338_v7 = vld [vmem:[%s2178_s4 + $0x20] sm:$0xff]  ;;  %v1484_v42 = vmov 0   ;;  %vm280_vm2 = vcmask 7168   ;;  %v1485_v43 = vmov -inf  }
  0x21   : > { %v1278_v6 = vpack.c.bf16 %v337_v5, %v336_v2  ;;  %v339_v8 = vld [vmem:[%s2178_s4 + $0x28] sm:$0xff]  ;;  %v340_v15 = vld [vmem:[%s2178_s4 + $0x30] sm:$0xff]  ;;  %v341_v16 = vld [vmem:[%s2178_s4 + $0x38] sm:$0xff]  ;;  %1374 = vset.pattern.permute.xlu1 %v1484_v42  ;;  %1375 = vset.pattern.permute.xlu0 %v1484_v42  ;;  %286 = vst.msk [vmem:[#allocation2 + $0x28] sm:$0xff] %vm280_vm2, %v1485_v43  ;;  %v1711_v45 = vand.u32 127, %v533_v44  ;;  %v1486_v62 = vmov 0.0  }
  0x22   : > { %1274 = vmatprep.subr.msk.bf16.mxu0 %vm1571_vm1, %v1272_v3  ;;  %1320 = vmatprep.subr.msk.bf16.mxu1 %vm1571_vm1, %v1272_v3  ;;  %s2190_s11 = smov (!%p259_p1, %s1161_s11), 15  ;;  %v1284_v14 = vpack.c.bf16 %v339_v8, %v338_v7  ;;  %v1290_v17 = vpack.c.bf16 %v341_v16, %v340_v15  ;;  %v342_v18 = vld [vmem:[%s2178_s4 + $0x40] sm:$0xff]  ;;  %v343_v19 = vld [vmem:[%s2178_s4 + $0x48] sm:$0xff]  ;;  %v344_v21 = vld [vmem:[%s2178_s4 + $0x50] sm:$0xff]  ;;  %281 = vst.msk [vmem:[#allocation2] sm:$0xff] %vm280_vm2, %v1485_v43  ;;  %s1192_s30 = sshll.u32 %s1473_s18, 6 }
  0x23   : > { %1277 = vmatpush3.bf16.xpose.msk.msra.mxu0 %vm1571_vm1, %v1272_v3  ;;  %1328 = vmatpush3.bf16.xpose.msk.msra.mxu1 %vm1571_vm1, %v1272_v3  ;;  %s1590_s15 = sshll.u32 %s2190_s11, 3  ;;  %v1296_v20 = vpack.c.bf16 %v343_v19, %v342_v18  ;;  %v345_v22 = vld [vmem:[%s2178_s4 + $0x58] sm:$0xff]  ;;  %v346_v24 = vld [vmem:[%s2178_s4 + $0x60] sm:$0xff]  ;;  %v347_v25 = vld [vmem:[%s2178_s4 + $0x68] sm:$0xff]  ;;  %282 = vst.msk [vmem:[#allocation2 + $0x8] sm:$0xff] %vm280_vm2, %v1485_v43  ;;  %vm555_vm3 = vcmp.lt.s32.totalorder %v1711_v45, 16 }
  0x24   : > { %1280 = vmatprep.subr.msk.bf16.mxu0 %vm1571_vm1, %v1278_v6  ;;  %1321 = vmatprep.subr.msk.bf16.mxu1 %vm1571_vm1, %v1278_v6  ;;  %s1602_s26 = scalar_lea.vmem %s2177_s3, %s1590_s15  ;;  %v1302_v23 = vpack.c.bf16 %v345_v22, %v344_v21  ;;  %v1308_v26 = vpack.c.bf16 %v347_v25, %v346_v24  ;;  %v348_v27 = vld [vmem:[%s2178_s4 + $0x70] sm:$0xff]  ;;  %v349_v28 = vld [vmem:[%s2178_s4 + $0x78] sm:$0xff]  ;;  %283 = vst.msk [vmem:[#allocation2 + $0x10] sm:$0xff] %vm280_vm2, %v1485_v43  ;;  %284 = vst.msk [vmem:[#allocation2 + $0x18] sm:$0xff] %vm280_vm2, %v1485_v43  ;;  %s1758_s29 = scalar_lea.vmem %s2175_s1, %s1590_s15  ;;  %v1822_v7 = vshrl.u32 %v533_v44, 7 }
  0x25   : > { %v315_v9 = vld [vmem:[%s1602_s26] sm:$0xff]  ;;  %v323_v10 = vstv %s313_s14  ;;  %v1314_v29 = vpack.c.bf16 %v349_v28, %v348_v27  ;;  %v316_v30 = vld [vmem:[%s1602_s26 + $0x8] sm:$0xff]  ;;  %v317_v32 = vld [vmem:[%s1602_s26 + $0x10] sm:$0xff]  ;;  %285 = vst.msk [vmem:[#allocation2 + $0x20] sm:$0xff] %vm280_vm2, %v1485_v43  ;;  %s2067_s7 = sld [smem:[#allocation6 + $0x1]]  ;;  %s2097_s11 = scalar_lea.vmem %s2179_s5, %s1590_s15 }
  0x26   : > { %v319_v11 = vld [vmem:[%s1602_s26 + $0x20] sm:$0xff]  ;;  %v324_v12 = vmul.f32 %v323_v10, %v315_v9  ;;  %v320_v31 = vld [vmem:[%s1602_s26 + $0x28] sm:$0xff]  ;;  %v321_v33 = vld [vmem:[%s1602_s26 + $0x30] sm:$0xff]  ;;  %v325_v34 = vmul.f32 %v323_v10, %v316_v30  ;;  %v326_v36 = vmul.f32 %v323_v10, %v317_v32  ;;  %287 = vst.msk [vmem:[#allocation2 + $0x30] sm:$0xff] %vm280_vm2, %v1485_v43  ;;  %v535_v18 = vadd.s32 8, %v1822_v7 }
  0x27   : > { %v328_v13 = vmul.f32 %v323_v10, %v319_v11  ;;  %v329_v35 = vmul.f32 %v323_v10, %v320_v31  ;;  %v318_v37 = vld [vmem:[%s1602_s26 + $0x18] sm:$0xff]  ;;  %v330_v38 = vmul.f32 %v323_v10, %v321_v33  ;;  %288 = vst.msk [vmem:[#allocation2 + $0x38] sm:$0xff] %vm280_vm2, %v1485_v43  ;;  %289 = vst.msk [vmem:[#allocation3] sm:$0xff] %vm280_vm2, %v1486_v62  ;;  %v588_v63 = vld [vmem:[%s1758_s29] sm:$0xff] }
  0x28   : > { %1260 = vmatprep.mubr.msk.f32.mxu0 %vm354_vm0, %v324_v12  ;;  %v322_v39 = vld [vmem:[%s1602_s26 + $0x38] sm:$0xff]  ;;  %v327_v40 = vmul.f32 %v323_v10, %v318_v37  ;;  %290 = vst.msk [vmem:[#allocation3 + $0x8] sm:$0xff] %vm280_vm2, %v1486_v62  ;;  %291 = vst.msk [vmem:[#allocation3 + $0x10] sm:$0xff] %vm280_vm2, %v1486_v62  ;;  %v589_v0 = vld [vmem:[%s1758_s29 + $0x8] sm:$0xff] }
  0x29   : > { %1266 = vmatprep.mubr.msk.f32.mxu1 %vm354_vm0, %v328_v13  ;;  %v331_v41 = vmul.f32 %v323_v10, %v322_v39  ;;  %292 = vst.msk [vmem:[#allocation3 + $0x18] sm:$0xff] %vm280_vm2, %v1486_v62  ;;  %293 = vst.msk [vmem:[#allocation3 + $0x20] sm:$0xff] %vm280_vm2, %v1486_v62  ;;  %v1810_v1 = vld [vmem:[#allocation2 + $0x28] sm:$0xff]  ;;  %v1824_v8 = vld [vmem:[#allocation2] sm:$0xff]  ;;  %v1828_v10 = vstv %s1192_s30 }
  0x2a   : > { %294 = vst.msk [vmem:[#allocation3 + $0x28] sm:$0xff] %vm280_vm2, %v1486_v62  ;;  %295 = vst.msk [vmem:[#allocation3 + $0x30] sm:$0xff] %vm280_vm2, %v1486_v62  ;;  %v1812_v2 = vld [vmem:[#allocation2 + $0x8] sm:$0xff]  ;;  %v591_v25 = vld [vmem:[%s1758_s29 + $0x18] sm:$0xff]  ;;  %v1874_v28 = vadd.s32 %v1828_v10, %v535_v18 }
  0x2b   : > { %1283 = vmatpush3.bf16.xpose.msk.msra.mxu0 %vm1571_vm1, %v1278_v6  ;;  %1329 = vmatpush3.bf16.xpose.msk.msra.mxu1 %vm1571_vm1, %v1278_v6  ;;  %296 = vst.msk [vmem:[#allocation3 + $0x38] sm:$0xff] %vm280_vm2, %v1486_v62  ;;  %297 = vst.msk [vmem:[#allocation4] sm:$0xff] %vm280_vm2, %v1486_v62  ;;  %v1826_v9 = vld [vmem:[#allocation2 + $0x18] sm:$0xff]  ;;  %s1036_s8 = ssub.f32 0.0, %s2067_s7 }
  0x2c   : > { %1286 = vmatprep.subr.msk.bf16.mxu0 %vm1571_vm1, %v1284_v14  ;;  %1322 = vmatprep.subr.msk.bf16.mxu1 %vm1571_vm1, %v1284_v14  ;;  %298 = vst.msk [vmem:[#allocation4 + $0x8] sm:$0xff] %vm280_vm2, %v1486_v62  ;;  %299 = vst.msk [vmem:[#allocation4 + $0x10] sm:$0xff] %vm280_vm2, %v1486_v62  ;;  %v1850_v19 = vld [vmem:[#allocation2 + $0x20] sm:$0xff]  ;;  %vm557_vm6 = vcmp.ne.s32.totalorder %v1874_v28, %v1711_v45  ;;  %v595_v43 = vld [vmem:[%s1758_s29 + $0x38] sm:$0xff] }
  0x2d   : > { %300 = vst.msk [vmem:[#allocation4 + $0x18] sm:$0xff] %vm280_vm2, %v1486_v62  ;;  %301 = vst.msk [vmem:[#allocation4 + $0x20] sm:$0xff] %vm280_vm2, %v1486_v62  ;;  %v1878_v30 = vld [vmem:[#allocation2 + $0x30] sm:$0xff] }
  0x2e   : > { %302 = vst.msk [vmem:[#allocation4 + $0x28] sm:$0xff] %vm280_vm2, %v1486_v62  ;;  %303 = vst.msk [vmem:[#allocation4 + $0x30] sm:$0xff] %vm280_vm2, %v1486_v62 }
  0x2f   : > { %304 = vst.msk [vmem:[#allocation4 + $0x38] sm:$0xff] %vm280_vm2, %v1486_v62  ;;  %305 = vst.msk [vmem:[#allocation5] sm:$0xff] %vm280_vm2, %v1486_v62 }
  0x30   : > { %306 = vst.msk [vmem:[#allocation5 + $0x8] sm:$0xff] %vm280_vm2, %v1486_v62  ;;  %307 = vst.msk [vmem:[#allocation5 + $0x10] sm:$0xff] %vm280_vm2, %v1486_v62 }
  0x31   : > { %308 = vst.msk [vmem:[#allocation5 + $0x18] sm:$0xff] %vm280_vm2, %v1486_v62  ;;  %309 = vst.msk [vmem:[#allocation5 + $0x20] sm:$0xff] %vm280_vm2, %v1486_v62 }
  0x32   : > { %310 = vst.msk [vmem:[#allocation5 + $0x28] sm:$0xff] %vm280_vm2, %v1486_v62  ;;  %311 = vst.msk [vmem:[#allocation5 + $0x30] sm:$0xff] %vm280_vm2, %v1486_v62 }
  0x33   : > { %1289 = vmatpush3.bf16.xpose.msk.msra.mxu0 %vm1571_vm1, %v1284_v14  ;;  %1330 = vmatpush3.bf16.xpose.msk.msra.mxu1 %vm1571_vm1, %v1284_v14  ;;  %312 = vst.msk [vmem:[#allocation5 + $0x38] sm:$0xff] %vm280_vm2, %v1486_v62  ;;  %vm565_vm7 = vmand %vm557_vm6, %vm555_vm3 }
  0x34   : > { %1292 = vmatprep.subr.msk.bf16.mxu0 %vm1571_vm1, %v1290_v17  ;;  %1323 = vmatprep.subr.msk.bf16.mxu1 %vm1571_vm1, %v1290_v17 }
  0x3b   : > { %1295 = vmatpush3.bf16.xpose.msk.msra.mxu0 %vm1571_vm1, %v1290_v17  ;;  %1331 = vmatpush3.bf16.xpose.msk.msra.mxu1 %vm1571_vm1, %v1290_v17  ;;  %v1847_v17 = vadd.s32 %v1828_v10, %v1822_v7 }
  0x3c   : > { %1298 = vmatprep.subr.msk.bf16.mxu0 %vm1571_vm1, %v1296_v20  ;;  %1324 = vmatprep.subr.msk.bf16.mxu1 %vm1571_vm1, %v1296_v20 }
  0x3d   : > { %vm556_vm4 = vcmp.ne.s32.totalorder %v1847_v17, %v1711_v45 }
  0x3e   : > { %vm564_vm5 = vmand %vm556_vm4, %vm555_vm3 }
  0x43   : > { %1301 = vmatpush3.bf16.xpose.msk.msra.mxu0 %vm1571_vm1, %v1296_v20  ;;  %1332 = vmatpush3.bf16.xpose.msk.msra.mxu1 %vm1571_vm1, %v1296_v20  ;;  %v1852_v20 = vld [vmem:[#allocation2 + $0x10] sm:$0xff] }
  0x44   : > { %1304 = vmatprep.subr.msk.bf16.mxu0 %vm1571_vm1, %v1302_v23  ;;  %1325 = vmatprep.subr.msk.bf16.mxu1 %vm1571_vm1, %v1302_v23 }
  0x4b   : > { %1307 = vmatpush3.bf16.xpose.msk.msra.mxu0 %vm1571_vm1, %v1302_v23  ;;  %1333 = vmatpush3.bf16.xpose.msk.msra.mxu1 %vm1571_vm1, %v1302_v23 }
  0x4c   : > { %1310 = vmatprep.subr.msk.bf16.mxu0 %vm1571_vm1, %v1308_v26  ;;  %1326 = vmatprep.subr.msk.bf16.mxu1 %vm1571_vm1, %v1308_v26 }
  0x53   : > { %1313 = vmatpush3.bf16.xpose.msk.msra.mxu0 %vm1571_vm1, %v1308_v26  ;;  %1334 = vmatpush3.bf16.xpose.msk.msra.mxu1 %vm1571_vm1, %v1308_v26 }
  0x54   : > { %1316 = vmatprep.subr.msk.bf16.mxu0 %vm1571_vm1, %v1314_v29  ;;  %1327 = vmatprep.subr.msk.bf16.mxu1 %vm1571_vm1, %v1314_v29 }
  0x5b   : > { %1319 = vmatpush3.bf16.xpose.msk.msra.mxu0 %vm1571_vm1, %v1314_v29  ;;  %1335 = vmatpush3.bf16.xpose.msk.msra.mxu1 %vm1571_vm1, %v1314_v29  ;;  %v1876_v29 = vld [vmem:[#allocation2 + $0x38] sm:$0xff] }
  0x62   : > { %1261 = vmatmul.mubr.msk.f32.vlgmr.msra.gmra.mrb[0].mxu0 %vm354_vm0, %v325_v34  ;;  %1267 = vmatmul.mubr.msk.f32.vlgmr.msra.gmra.mrb[0].mxu1 %vm354_vm0, %v329_v35  ;;  %v593_v34 = vld [vmem:[%s1758_s29 + $0x28] sm:$0xff] }
  0x63   : > { %1263 = vmatprep.mubr.msk.f32.mxu0 %vm354_vm0, %v326_v36  ;;  %1269 = vmatprep.mubr.msk.f32.mxu1 %vm354_vm0, %v330_v38  ;;  %v1903_v38 = vld [vmem:[%s2176_s2] ss:$0 sm:$0xff] }
  0x66   : > { %1264 = vmatmul.mubr.msk.f32.gmra.mrb[2].mxu0 %vm354_vm0, %v327_v40  ;;  %1270 = vmatmul.mubr.msk.f32.gmra.mrb[2].mxu1 %vm354_vm0, %v331_v41  ;;  %v1915_v41 = vsel %vm564_vm5, 1.0, %v1486_v62 }
 0x135   : > { %v1714_v46 = vpop.f32.mrb[0].mxu0  ;;  %v1716_v47 = vpop.f32.mrb[0].mxu1 }
 0x136   : > { %v1718_v48 = vpop.f32.mrb[1].mxu0  ;;  %v645_v49 = vsel %vm555_vm3, %v1716_v47, -inf  ;;  %v641_v50 = vsel %vm555_vm3, %v1714_v46, -inf  ;;  %v1726_v51 = vpop.f32.mrb[1].mxu1 }
 0x137   : > { %658 = vmax.xlane.f32.xlu1 %v645_v49  ;;  %650 = vmax.xlane.f32.xlu0 %v641_v50  ;;  %v640_v54 = vsel %vm555_vm3, %v1718_v48, -inf  ;;  %v644_v59 = vsel %vm555_vm3, %v1726_v51, -inf  ;;  %v1924_v49 = vsel %vm565_vm7, 1.0, %v1486_v62 }
 0x139   : > { %v1728_v52 = vpop.f32.mrb[2].mxu0  ;;  %v1730_v53 = vpop.f32.mrb[2].mxu1 }
 0x13a   : > { %v643_v55 = vsel %vm555_vm3, %v1728_v52, -inf  ;;  %v1738_v56 = vpop.f32.mrb[3].mxu0  ;;  %v1740_v57 = vpop.f32.mrb[3].mxu1  ;;  %v647_v61 = vsel %vm555_vm3, %v1730_v53, -inf }
 0x13b   : > { %648 = vmax.xlane.f32.xlu0 %v640_v54  ;;  %654 = vmax.xlane.f32.xlu1 %v643_v55  ;;  %v642_v58 = vsel %vm555_vm3, %v1738_v56, -inf  ;;  %v646_v60 = vsel %vm555_vm3, %v1740_v57, -inf }
 0x13f   : > { %656 = vmax.xlane.f32.xlu0 %v644_v59  ;;  %652 = vmax.xlane.f32.xlu1 %v642_v58  ;;  %v590_v59 = vld [vmem:[%s1758_s29 + $0x10] sm:$0xff] }
 0x143   : > { %660 = vmax.xlane.f32.xlu0 %v646_v60  ;;  %662 = vmax.xlane.f32.xlu1 %v647_v61  ;;  %v592_v60 = vld [vmem:[%s1758_s29 + $0x20] sm:$0xff]  ;;  %v594_v61 = vld [vmem:[%s1758_s29 + $0x30] sm:$0xff] }
 0x154   : > { %597 = vperm.xlu1 %1374, %v588_v63   ;;  %v537_v63 = vadd.s32 24, %v1822_v7 }
 0x159   : > { %600 = vperm.xlu0 %1375, %v589_v0   ;;  %v1939_v0 = vadd.s32 %v1828_v10, %v537_v63 }
 0x15b   : > { %vm559_vm10 = vcmp.ne.s32.totalorder %v1939_v0, %v1711_v45 }
 0x15c   : > { %vm567_vm11 = vmand %vm559_vm10, %vm555_vm3 }
 0x1c4   : > { %v659_v3 = vpop.xlane.xlu1 %658  ;;  %v651_v4 = vpop.xlane.xlu0 %650 }
 0x1c5   : > { %v1816_v5 = vmax.f32 %v1810_v1, %v659_v3  ;;  %v1819_v6 = vmax.f32 %v1812_v2, %v651_v4  ;;  %v539_v3 = vadd.s32 40, %v1822_v7 }
 0x1c7   : > { %v685_v11 = vsub.f32 %v1810_v1, %v1816_v5  ;;  %918 = vst.msk [vmem:[#allocation2 + $0x28] sm:$0xff] %vm280_vm2, %v1816_v5  ;;  %v681_v12 = vsub.f32 %v1812_v2, %v1819_v6  ;;  %914 = vst.msk [vmem:[#allocation2 + $0x8] sm:$0xff] %vm280_vm2, %v1819_v6  ;;  %711 = vperm.xlu1 %1374, %v1819_v6   ;;  %v880_v2 = vld [vmem:[#allocation5 + $0x38] sm:$0xff] }
 0x1c8   : > { %v649_v13 = vpop.xlane.xlu0 %648  ;;  %v655_v14 = vpop.xlane.xlu1 %654 }
 0x1c9   : > { %v1840_v15 = vmax.f32 %v1824_v8, %v649_v13  ;;  %v1843_v16 = vmax.f32 %v1826_v9, %v655_v14  ;;  %v1945_v13 = vadd.s32 %v1828_v10, %v539_v3  ;;  %v541_v14 = vadd.s32 56, %v1822_v7 }
 0x1cb   : > { %v680_v21 = vsub.f32 %v1824_v8, %v1840_v15  ;;  %913 = vst.msk [vmem:[#allocation2] sm:$0xff] %vm280_vm2, %v1840_v15  ;;  %v683_v22 = vsub.f32 %v1826_v9, %v1843_v16  ;;  %916 = vst.msk [vmem:[#allocation2 + $0x18] sm:$0xff] %vm280_vm2, %v1843_v16  ;;  %706 = vperm.xlu0 %1375, %v1840_v15   ;;  %731 = vperm.xlu1 %1374, %v1816_v5   ;;  %v826_v5 = vld [vmem:[#allocation4 + $0x8] sm:$0xff] }
 0x1cc   : > { %v657_v23 = vpop.xlane.xlu0 %656  ;;  %v653_v24 = vpop.xlane.xlu1 %652  ;;  %vm561_vm12 = vcmp.ne.s32.totalorder %v1945_v13, %v1711_v45 }
 0x1cd   : > { %v1866_v26 = vmax.f32 %v1850_v19, %v657_v23  ;;  %v1869_v27 = vmax.f32 %v1852_v20, %v653_v24  ;;  %vm569_vm13 = vmand %vm561_vm12, %vm555_vm3 }
 0x1cf   : > { %v684_v31 = vsub.f32 %v1850_v19, %v1866_v26  ;;  %917 = vst.msk [vmem:[#allocation2 + $0x20] sm:$0xff] %vm280_vm2, %v1866_v26  ;;  %v682_v32 = vsub.f32 %v1852_v20, %v1869_v27  ;;  %915 = vst.msk [vmem:[#allocation2 + $0x10] sm:$0xff] %vm280_vm2, %v1869_v27  ;;  %606 = vperm.xlu0 %1375, %v591_v25   ;;  %726 = vperm.xlu1 %1374, %v1866_v26  }
 0x1d0   : > { %v663_v33 = vpop.xlane.xlu1 %662  ;;  %v661_v35 = vpop.xlane.xlu0 %660  ;;  %v1954_v25 = vadd.s32 %v1828_v10, %v541_v14 }
 0x1d1   : > { %v1893_v36 = vmax.f32 %v1876_v29, %v663_v33  ;;  %v1896_v37 = vmax.f32 %v1878_v30, %v661_v35  ;;  %v1957_v33 = vsel %vm567_vm11, 1.0, %v1486_v62  ;;  %v692_v19 = vmul.f32 1.442695, %v682_v32 }
 0x1d2   : > { %vm563_vm15 = vcmp.ne.s32.totalorder %v1954_v25, %v1711_v45 }
 0x1d3   : > { %v687_v39 = vsub.f32 %v1876_v29, %v1893_v36  ;;  %920 = vst.msk [vmem:[#allocation2 + $0x38] sm:$0xff] %vm280_vm2, %v1893_v36  ;;  %612 = vperm.xlu0 %1375, %v593_v34   ;;  %721 = vperm.xlu1 %1374, %v1843_v16   ;;  %919 = vst.msk [vmem:[#allocation2 + $0x30] sm:$0xff] %vm280_vm2, %v1896_v37  ;;  %v2184_v20 = vsub.f32 %v1878_v30, %v1896_v37 }
 0x1d4   : > { %v598_v42 = vpop.permute.xlu1 %597  ;;  %vm571_vm0 = vmand %vm563_vm15, %vm555_vm3 }
 0x1d5   : > { %vm624_vm8 = vcmp.eq.s32.totalorder %v598_v42, %v1903_v38  ;;  %v1200_v3 = vsel %vm571_vm0, 1.0, %v1486_v62  ;;  %v702_v1 = vmul.f32 1.442695, %v687_v39  ;;  %v875_v39 = vld [vmem:[#allocation5 + $0x10] sm:$0xff]  ;;  %vm1015_vm0 = vcmp.lt.s32.totalorder %v1939_v0, 16 }
 0x1d6   : > { %v632_v44 = vsel %vm624_vm8, %v1915_v41, 0.0 }
 0x1d7   : > { %618 = vperm.xlu0 %1375, %v595_v43   ;;  %741 = vperm.xlu1 %1374, %v1893_v36   ;;  %v1927_v50 = vmul.f32 %v632_v44, %v1718_v48  ;;  %v688_v36 = vmul.f32 1.442695, %v680_v21 }
 0x1d8   : > { %v601_v54 = vpop.permute.xlu0 %600 }
 0x1d9   : > { %vm625_vm9 = vcmp.eq.s32.totalorder %v601_v54, %v1903_v38 }
 0x1da   : > { %v633_v55 = vsel %vm625_vm9, %v1924_v49, 0.0 }
 0x1db   : > { %716 = vperm.xlu1 %1374, %v1869_v27   ;;  %v834_v58 = vmul.f32 %v1714_v46, %v633_v55  ;;  %v700_v27 = vmul.f32 1.442695, %v2184_v20 }
 0x1df   : > { %736 = vperm.xlu1 %1374, %v1896_v37  }
 0x1e3   : > { %603 = vperm.xlu1 %1374, %v590_v59  }
 0x1e7   : > { %609 = vperm.xlu1 %1374, %v592_v60  }
 0x1eb   : > { %615 = vperm.xlu1 %1374, %v594_v61   ;;  %v536_v61 = vadd.s32 16, %v1822_v7 }
 0x1f6   : > { %883 = vadd.xlane.f32.xlu0 %v633_v55 }
 0x20f   : > { %881 = vadd.xlane.f32.xlu1 %v632_v44  ;;  %v1198_v44 = vsel %vm569_vm13, 1.0, %v1486_v62 }
 0x246   : > { %v712_v4 = vpop.permute.xlu1 %711 }
 0x247   : > { %v745_v18 = vsub.f32 %v1714_v46, %v712_v4 }
 0x249   : > { %v754_v34 = vmul.f32 1.442695, %v745_v18 }
 0x24a   : > { %v707_v23 = vpop.permute.xlu0 %706  ;;  %v732_v24 = vpop.permute.xlu1 %731 }
 0x24b   : > { %v749_v35 = vsub.f32 %v1716_v47, %v732_v24  ;;  %1376 = vpow2.f32 %v754_v34  ;;  %v1982_v34 = vadd.s32 %v1828_v10, %v536_v61  ;;  %v744_v61 = vsub.f32 %v1718_v48, %v707_v23 }
 0x24d   : > { %v762_v54 = vmul.f32 1.442695, %v749_v35  ;;  %vm558_vm5 = vcmp.ne.s32.totalorder %v1982_v34, %v1711_v45 }
 0x24e   : > { %v607_v42 = vpop.permute.xlu0 %606  ;;  %v727_v43 = vpop.permute.xlu1 %726  ;;  %vm566_vm6 = vmand %vm558_vm5, %vm555_vm3 }
 0x24f   : > { %vm627_vm14 = vcmp.eq.s32.totalorder %v607_v42, %v1903_v38  ;;  %1378 = vpow2.f32 %v762_v54  ;;  %v538_v42 = vadd.s32 32, %v1822_v7  ;;  %v540_v54 = vadd.s32 48, %v1822_v7 }
 0x250   : > { %v1966_v46 = vsel %vm627_vm14, %v1957_v33, 0.0  ;;  %v1195_v7 = vsel %vm566_vm6, 1.0, %v1486_v62  ;;  %v748_v48 = vsub.f32 %v1726_v51, %v727_v43 }
 0x251   : > { %887 = vadd.xlane.f32.xlu1 %v1966_v46 }
 0x252   : > { %v613_v55 = vpop.permute.xlu0 %612  ;;  %v722_v59 = vpop.permute.xlu1 %721 }
 0x253   : > { %vm629_vm1 = vcmp.eq.s32.totalorder %v613_v55, %v1903_v38  ;;  %v747_v60 = vsub.f32 %v1728_v52, %v722_v59 }
 0x254   : > { %v1975_v63 = vsel %vm629_vm1, %v1198_v44, 0.0 }
 0x255   : > { %891 = vadd.xlane.f32.xlu1 %v1975_v63  ;;  %v758_v4 = vmul.f32 1.442695, %v747_v60  ;;  %v1377_v60 = vpop.eup %1376 }
 0x256   : > { %v619_v14 = vpop.permute.xlu0 %618  ;;  %v742_v18 = vpop.permute.xlu1 %741 }
 0x257   : > { %vm631_vm4 = vcmp.eq.s32.totalorder %v619_v14, %v1903_v38  ;;  %v751_v24 = vsub.f32 %v1730_v53, %v742_v18  ;;  %1380 = vpow2.f32 %v758_v4  ;;  %v1992_v14 = vadd.s32 %v1828_v10, %v538_v42 }
 0x258   : > { %v1984_v35 = vsel %vm631_vm4, %v1200_v3, 0.0  ;;  %v769_v4 = vmul.f32 %v1377_v60, %v1924_v49  ;;  %vm1017_vm4 = vcmp.lt.s32.totalorder %v1945_v13, 16 }
 0x259   : > { %895 = vadd.xlane.f32.xlu1 %v1984_v35  ;;  %v766_v55 = vmul.f32 1.442695, %v751_v24  ;;  %v1999_v24 = vadd.s32 %v1828_v10, %v540_v54  ;;  %v1379_v40 = vpop.eup %1378  ;;  %vm560_vm7 = vcmp.ne.s32.totalorder %v1992_v14, %v1711_v45 }
 0x25a   : > { %v717_v59 = vpop.permute.xlu1 %716  ;;  %v773_v42 = vmul.f32 %v1379_v40, %v1198_v44  ;;  %vm568_vm10 = vmand %vm560_vm7, %vm555_vm3  ;;  %vm1019_vm7 = vcmp.lt.s32.totalorder %v1954_v25, 16 }
 0x25b   : > { %1382 = vpow2.f32 %v766_v55  ;;  %vm562_vm9 = vcmp.ne.s32.totalorder %v1999_v24, %v1711_v45  ;;  %v760_v55 = vmul.f32 1.442695, %v748_v48  ;;  %v746_v54 = vsub.f32 %v1738_v56, %v717_v59 }
 0x25c   : > { %vm570_vm11 = vmand %vm562_vm9, %vm555_vm3  ;;  %v1197_v43 = vsel %vm568_vm10, 1.0, %v1486_v62  ;;  %vm1013_vm3 = vcmp.lt.s32.totalorder %v1874_v28, 16 }
 0x25d   : > { %843 = vadd.xlane.f32.xlu1 %v834_v58  ;;  %v752_v58 = vmul.f32 1.442695, %v744_v61 }
 0x25e   : > { %v737_v18 = vpop.permute.xlu1 %736 }
 0x25f   : > { %1384 = vpow2.f32 %v752_v58  ;;  %v756_v58 = vmul.f32 1.442695, %v746_v54  ;;  %v750_v59 = vsub.f32 %v1740_v57, %v737_v18 }
 0x260   : > { %1386 = vpow2.f32 %v760_v55 }
 0x261   : > { %794 = vadd.xlane.f32.xlu1 %v769_v4  ;;  %v1381_v49 = vpop.eup %1380  ;;  %v1199_v4 = vsel %vm570_vm11, 1.0, %v1486_v62  ;;  %1388 = vpow2.f32 %v756_v58  ;;  %v838_v62 = vmul.f32 %v1716_v47, %v1975_v63  ;;  %vm1012_vm11 = vcmp.lt.s32.totalorder %v1847_v17, 16 }
 0x262   : > { %v604_v23 = vpop.permute.xlu1 %603  ;;  %v771_v40 = vmul.f32 %v1381_v49, %v1957_v33  ;;  %v764_v33 = vmul.f32 1.442695, %v750_v59  ;;  %v694_v59 = vmul.f32 1.442695, %v683_v22 }
 0x263   : > { %vm626_vm8 = vcmp.eq.s32.totalorder %v604_v23, %v1903_v38 }
 0x264   : > { %v634_v10 = vsel %vm626_vm8, %v1195_v7, 0.0  ;;  %1390 = vpow2.f32 %v764_v33 }
 0x265   : > { %802 = vadd.xlane.f32.xlu1 %v773_v42  ;;  %885 = vadd.xlane.f32.xlu0 %v634_v10  ;;  %v1383_v44 = vpop.eup %1382  ;;  %v836_v42 = vmul.f32 %v1728_v52, %v1966_v46  ;;  %v835_v47 = vmul.f32 %v634_v10, %v1738_v56  ;;  %v690_v56 = vmul.f32 1.442695, %v681_v12  ;;  %v876_v10 = vld [vmem:[#allocation5 + $0x18] sm:$0xff] }
 0x266   : > { %v610_v60 = vpop.permute.xlu1 %609  ;;  %v775_v45 = vmul.f32 %v1383_v44, %v1200_v3  ;;  %v840_v3 = vmul.f32 %v1730_v53, %v1984_v35  ;;  %v873_v35 = vld [vmem:[#allocation5] sm:$0xff] }
 0x267   : > { %vm628_vm12 = vcmp.eq.s32.totalorder %v610_v60, %v1903_v38  ;;  %v874_v60 = vld [vmem:[#allocation5 + $0x8] sm:$0xff]  ;;  %1392 = vpow2.f32 %v690_v56 }
 0x268   : > { %v636_v61 = vsel %vm628_vm12, %v1197_v43, 0.0 }
 0x269   : > { %798 = vadd.xlane.f32.xlu1 %v771_v40  ;;  %889 = vadd.xlane.f32.xlu0 %v636_v61  ;;  %v1385_v49 = vpop.eup %1384  ;;  %v837_v40 = vmul.f32 %v636_v61, %v1726_v51  ;;  %v698_v51 = vmul.f32 1.442695, %v685_v11  ;;  %v878_v61 = vld [vmem:[#allocation5 + $0x28] sm:$0xff] }
 0x26a   : > { %v616_v48 = vpop.permute.xlu1 %615  ;;  %v768_v18 = vmul.f32 %v1385_v49, %v1915_v41 }
 0x26b   : > { %vm630_vm13 = vcmp.eq.s32.totalorder %v616_v48, %v1903_v38  ;;  %v1387_v38 = vpop.eup %1386  ;;  %1394 = vpow2.f32 %v698_v51  ;;  %v828_v51 = vld [vmem:[#allocation4 + $0x18] sm:$0xff] }
 0x26c   : > { %v638_v23 = vsel %vm630_vm13, %v1199_v4, 0.0  ;;  %v772_v55 = vmul.f32 %v1387_v38, %v1197_v43  ;;  %v1389_v54 = vpop.eup %1388  ;;  %1396 = vpow2.f32 %v694_v59 }
 0x26d   : > { %806 = vadd.xlane.f32.xlu1 %v775_v45  ;;  %893 = vadd.xlane.f32.xlu0 %v638_v23  ;;  %v770_v52 = vmul.f32 %v1389_v54, %v1195_v7  ;;  %v839_v53 = vmul.f32 %v638_v23, %v1740_v57  ;;  %v777_v45 = vld [vmem:[#allocation3 + $0x8] sm:$0xff]  ;;  %1398 = vpow2.f32 %v702_v1 }
 0x26e   : > { %v1391_v46 = vpop.eup %1390 }
 0x271   : > { %847 = vadd.xlane.f32.xlu1 %v836_v42  ;;  %841 = vadd.xlane.f32.xlu0 %v1927_v50  ;;  %v774_v50 = vmul.f32 %v1391_v46, %v1199_v4  ;;  %v1393_v11 = vpop.eup %1392  ;;  %v781_v42 = vld [vmem:[#allocation3 + $0x28] sm:$0xff]  ;;  %v696_v46 = vmul.f32 1.442695, %v684_v31  ;;  %v879_v31 = vld [vmem:[#allocation5 + $0x30] sm:$0xff] }
 0x272   : > { %v785_v16 = vmul.f32 %v1393_v11, %v777_v45 }
 0x275   : > { %851 = vadd.xlane.f32.xlu1 %v838_v62  ;;  %792 = vadd.xlane.f32.xlu0 %v768_v18  ;;  %v1395_v22 = vpop.eup %1394 }
 0x276   : > { %v789_v62 = vmul.f32 %v1395_v22, %v781_v42  ;;  %v1397_v18 = vpop.eup %1396 }
 0x277   : > { %v1399_v15 = vpop.eup %1398 }
 0x279   : > { %855 = vadd.xlane.f32.xlu1 %v840_v3  ;;  %800 = vadd.xlane.f32.xlu0 %v772_v55  ;;  %v779_v55 = vld [vmem:[#allocation3 + $0x18] sm:$0xff] }
 0x27a   : > { %v787_v8 = vmul.f32 %v1397_v18, %v779_v55  ;;  %v832_v55 = vld [vmem:[#allocation4 + $0x38] sm:$0xff] }
 0x27d   : > { %796 = vadd.xlane.f32.xlu0 %v770_v52 }
 0x281   : > { %804 = vadd.xlane.f32.xlu0 %v774_v50  ;;  %v877_v50 = vld [vmem:[#allocation5 + $0x20] sm:$0xff] }
 0x283   : > { %v884_v63 = vpop.xlane.xlu0 %883 }
 0x284   : > { %v898_v41 = vadd.f32 %v884_v63, %v874_v60 }
 0x285   : > { %845 = vadd.xlane.f32.xlu0 %v835_v47  ;;  %v783_v47 = vld [vmem:[#allocation3 + $0x38] sm:$0xff] }
 0x286   : > { %906 = vst.msk [vmem:[#allocation5 + $0x8] sm:$0xff] %vm280_vm2, %v898_v41 }
 0x289   : > { %849 = vadd.xlane.f32.xlu0 %v837_v40 }
 0x28d   : > { %853 = vadd.xlane.f32.xlu0 %v839_v53  ;;  %v2047_v9 = vld [vmem:[#allocation5 + $0x8] sm:$0xff] }
 0x28e   : > { %v933_v49 = vmax.f32 %v2047_v9, 1.0  ;;  %vm1021_vm14 = vcmp.gt.f32.partialorder %v2047_v9, 0.0 }
 0x28f   : > { %vm1029_vm15 = vmand %vm1013_vm3, %vm1021_vm14  ;;  %vm1014_vm3 = vcmp.lt.s32.totalorder %v1982_v34, 16  ;;  %v970_v34 = vld [vmem:[#allocation2 + $0x30] sm:$0xff] }
 0x290   : > { %1400 = vrcp.f32 %v933_v49  ;;  %v780_v49 = vld [vmem:[#allocation3 + $0x20] sm:$0xff] }
 0x291   : > { %1402 = vpow2.f32 %v688_v36  ;;  %v965_v36 = vld [vmem:[#allocation2 + $0x8] sm:$0xff] }
 0x292   : > { %1404 = vpow2.f32 %v696_v46 }
 0x29c   : > { %v882_v7 = vpop.xlane.xlu1 %881 }
 0x29d   : > { %v897_v43 = vadd.f32 %v882_v7, %v873_v35  ;;  %v791_v35 = vmul.f32 %v1399_v15, %v783_v47 }
 0x29f   : > { %905 = vst.msk [vmem:[#allocation5] sm:$0xff] %vm280_vm2, %v897_v43 }
 0x2a6   : > { %v2084_v22 = vld [vmem:[#allocation5] sm:$0xff] }
 0x2a7   : > { %vm1020_vm12 = vcmp.gt.f32.partialorder %v2084_v22, 0.0 }
 0x2a8   : > { %vm1028_vm13 = vmand %vm1012_vm11, %vm1020_vm12 }
 0x2de   : > { %v888_v44 = vpop.xlane.xlu1 %887 }
 0x2df   : > { %v900_v4 = vadd.f32 %v888_v44, %v876_v10 }
 0x2e1   : > { %908 = vst.msk [vmem:[#allocation5 + $0x18] sm:$0xff] %vm280_vm2, %v900_v4  ;;  %v825_v4 = vld [vmem:[#allocation4] sm:$0xff] }
 0x2e2   : > { %v892_v57 = vpop.xlane.xlu1 %891 }
 0x2e3   : > { %v902_v58 = vadd.f32 %v892_v57, %v878_v61  ;;  %v1401_v61 = vpop.eup %1400 }
 0x2e5   : > { %910 = vst.msk [vmem:[#allocation5 + $0x28] sm:$0xff] %vm280_vm2, %v902_v58  ;;  %v1403_v58 = vpop.eup %1402 }
 0x2e6   : > { %v896_v6 = vpop.xlane.xlu1 %895 }
 0x2e7   : > { %v904_v12 = vadd.f32 %v896_v6, %v880_v2  ;;  %v776_v2 = vld [vmem:[#allocation3] sm:$0xff] }
 0x2e8   : > { %v2060_v63 = vld [vmem:[#allocation5 + $0x18] sm:$0xff] }
 0x2e9   : > { %912 = vst.msk [vmem:[#allocation5 + $0x38] sm:$0xff] %vm280_vm2, %v904_v12  ;;  %v935_v7 = vmax.f32 %v2060_v63, 1.0  ;;  %vm1023_vm1 = vcmp.gt.f32.partialorder %v2060_v63, 0.0 }
 0x2ea   : > { %v844_v48 = vpop.xlane.xlu1 %843  ;;  %vm1031_vm5 = vmand %vm1015_vm0, %vm1023_vm1 }
 0x2eb   : > { %v858_v23 = vadd.f32 %v844_v48, %v826_v5  ;;  %v830_v48 = vld [vmem:[#allocation4 + $0x28] sm:$0xff] }
 0x2ec   : > { %v2065_v53 = vld [vmem:[#allocation5 + $0x28] sm:$0xff] }
 0x2ed   : > { %866 = vst.msk [vmem:[#allocation4 + $0x8] sm:$0xff] %vm280_vm2, %v858_v23  ;;  %v937_v44 = vmax.f32 %v2065_v53, 1.0  ;;  %v784_v23 = vmul.f32 %v1403_v58, %v776_v2  ;;  %v969_v2 = vld [vmem:[#allocation2 + $0x28] sm:$0xff]  ;;  %vm1025_vm6 = vcmp.gt.f32.partialorder %v2065_v53, 0.0 }
 0x2ee   : > { %v795_v33 = vpop.xlane.xlu1 %794  ;;  %vm1033_vm8 = vmand %vm1017_vm4, %vm1025_vm6 }
 0x2ef   : > { %v809_v29 = vadd.f32 %v795_v33, %v785_v16  ;;  %v1405_v16 = vpop.eup %1404 }
 0x2f0   : > { %v2078_v59 = vld [vmem:[#allocation5 + $0x38] sm:$0xff]  ;;  %v788_v46 = vmul.f32 %v1405_v16, %v780_v49  ;;  %v827_v49 = vld [vmem:[#allocation4 + $0x10] sm:$0xff] }
 0x2f1   : > { %818 = vst.msk [vmem:[#allocation3 + $0x8] sm:$0xff] %vm280_vm2, %v809_v29  ;;  %v939_v45 = vmax.f32 %v2078_v59, 1.0  ;;  %vm1027_vm9 = vcmp.gt.f32.partialorder %v2078_v59, 0.0 }
 0x2f2   : > { %v886_v38 = vpop.xlane.xlu0 %885  ;;  %v803_v3 = vpop.xlane.xlu1 %802  ;;  %vm1035_vm10 = vmand %vm1019_vm7, %vm1027_vm9 }
 0x2f3   : > { %v899_v54 = vadd.f32 %v886_v38, %v875_v39  ;;  %v813_v52 = vadd.f32 %v803_v3, %v789_v62 }
 0x2f4   : > { %v941_v57 = vld [vmem:[#allocation4 + $0x8] sm:$0xff] }
 0x2f5   : > { %907 = vst.msk [vmem:[#allocation5 + $0x10] sm:$0xff] %vm280_vm2, %v899_v54  ;;  %822 = vst.msk [vmem:[#allocation3 + $0x28] sm:$0xff] %vm280_vm2, %v813_v52  ;;  %v951_v5 = vmul.f32 %v1401_v61, %v941_v57  ;;  %v932_v54 = vmax.f32 %v2084_v22, 1.0  ;;  %v2087_v52 = vstv %s1036_s8 }
 0x2f6   : > { %v890_v21 = vpop.xlane.xlu0 %889  ;;  %v799_v60 = vpop.xlane.xlu1 %798 }
 0x2f7   : > { %v901_v41 = vadd.f32 %v890_v21, %v877_v50  ;;  %v811_v40 = vadd.f32 %v799_v60, %v787_v8  ;;  %v973_v18 = vsub.f32 %v951_v5, %v965_v36  ;;  %v778_v60 = vld [vmem:[#allocation3 + $0x10] sm:$0xff] }
 0x2f8   : > { %v981_v26 = vld [vmem:[#allocation3 + $0x8] sm:$0xff] }
 0x2f9   : > { %1406 = vlog2.f32 %v981_v26  ;;  %909 = vst.msk [vmem:[#allocation5 + $0x20] sm:$0xff] %vm280_vm2, %v901_v41  ;;  %820 = vst.msk [vmem:[#allocation3 + $0x18] sm:$0xff] %vm280_vm2, %v811_v40 }
 0x2fa   : > { %v894_v43 = vpop.xlane.xlu0 %893  ;;  %v807_v56 = vpop.xlane.xlu1 %806  ;;  %1408 = vpow2.f32 %v692_v19 }
 0x2fb   : > { %v903_v32 = vadd.f32 %v894_v43, %v879_v31  ;;  %v815_v10 = vadd.f32 %v807_v56, %v791_v35  ;;  %1410 = vrcp.f32 %v935_v7  ;;  %v967_v43 = vld [vmem:[#allocation2 + $0x18] sm:$0xff] }
 0x2fc   : > { %1412 = vpow2.f32 %v700_v27  ;;  %v985_v6 = vld [vmem:[#allocation3 + $0x28] sm:$0xff]  ;;  %v782_v27 = vld [vmem:[#allocation3 + $0x30] sm:$0xff] }
 0x2fd   : > { %911 = vst.msk [vmem:[#allocation5 + $0x30] sm:$0xff] %vm280_vm2, %v903_v32  ;;  %824 = vst.msk [vmem:[#allocation3 + $0x38] sm:$0xff] %vm280_vm2, %v815_v10  ;;  %1414 = vrcp.f32 %v937_v44  ;;  %v2106_v10 = vld [vmem:[#allocation5 + $0x10] sm:$0xff] }
 0x2fe   : > { %v842_v30 = vpop.xlane.xlu0 %841  ;;  %v848_v37 = vpop.xlane.xlu1 %847  ;;  %vm1022_vm14 = vcmp.gt.f32.partialorder %v2106_v10, 0.0 }
 0x2ff   : > { %v857_v12 = vadd.f32 %v842_v30, %v825_v4  ;;  %v860_v1 = vadd.f32 %v848_v37, %v828_v51  ;;  %vm1030_vm0 = vmand %vm1014_vm3, %vm1022_vm14 }
 0x300   : > { %v983_v11 = vld [vmem:[#allocation3 + $0x18] sm:$0xff]  ;;  %v2108_v58 = vld [vmem:[#allocation5 + $0x20] sm:$0xff] }
 0x301   : > { %1416 = vlog2.f32 %v983_v11  ;;  %865 = vst.msk [vmem:[#allocation4] sm:$0xff] %vm280_vm2, %v857_v12  ;;  %868 = vst.msk [vmem:[#allocation4 + $0x18] sm:$0xff] %vm280_vm2, %v860_v1  ;;  %v936_v16 = vmax.f32 %v2108_v58, 1.0  ;;  %vm1024_vm1 = vcmp.gt.f32.partialorder %v2108_v58, 0.0 }
 0x302   : > { %1418 = vlog2.f32 %v985_v6  ;;  %v793_v33 = vpop.xlane.xlu0 %792  ;;  %v852_v42 = vpop.xlane.xlu1 %851  ;;  %v934_v6 = vmax.f32 %v2106_v10, 1.0 }
 0x303   : > { %v1407_v29 = vpop.eup %1406  ;;  %v808_v39 = vadd.f32 %v793_v33, %v784_v23  ;;  %v862_v62 = vadd.f32 %v852_v42, %v830_v48  ;;  %1420 = vrcp.f32 %v939_v45 }
 0x304   : > { %v991_v38 = vmul.f32 0.6931472, %v1407_v29  ;;  %v987_v3 = vld [vmem:[#allocation3 + $0x38] sm:$0xff]  ;;  %v1409_v50 = vpop.eup %1408 }
 0x305   : > { %817 = vst.msk [vmem:[#allocation3] sm:$0xff] %vm280_vm2, %v808_v39  ;;  %870 = vst.msk [vmem:[#allocation4 + $0x28] sm:$0xff] %vm280_vm2, %v862_v62  ;;  %1422 = vlog2.f32 %v987_v3  ;;  %v1411_v40 = vpop.eup %1410  ;;  %v786_v35 = vmul.f32 %v1409_v50, %v778_v60  ;;  %v971_v39 = vld [vmem:[#allocation2 + $0x38] sm:$0xff]  ;;  %v2121_v62 = vld [vmem:[#allocation5 + $0x30] sm:$0xff] }
 0x306   : > { %v1005_v8 = vsub.f32 %v973_v18, %v991_v38  ;;  %v801_v15 = vpop.xlane.xlu0 %800  ;;  %v856_v21 = vpop.xlane.xlu1 %855  ;;  %1424 = vrcp.f32 %v932_v54  ;;  %v938_v60 = vmax.f32 %v2121_v62, 1.0  ;;  %vm1026_vm6 = vcmp.gt.f32.partialorder %v2121_v62, 0.0 }
 0x307   : > { %v812_v47 = vadd.f32 %v801_v15, %v788_v46  ;;  %v864_v41 = vadd.f32 %v856_v21, %v832_v55  ;;  %v1413_v31 = vpop.eup %1412  ;;  %v829_v21 = vld [vmem:[#allocation4 + $0x20] sm:$0xff] }
 0x308   : > { %v1039_v19 = vmul.f32 %v2087_v52, %v1005_v8  ;;  %v943_v26 = vld [vmem:[#allocation4 + $0x18] sm:$0xff]  ;;  %v1415_v7 = vpop.eup %1414  ;;  %v790_v37 = vmul.f32 %v1413_v31, %v782_v27  ;;  %v940_v63 = vld [vmem:[#allocation4] sm:$0xff] }
 0x309   : > { %v955_v9 = vmul.f32 %v1411_v40, %v943_v26  ;;  %821 = vst.msk [vmem:[#allocation3 + $0x20] sm:$0xff] %vm280_vm2, %v812_v47  ;;  %872 = vst.msk [vmem:[#allocation4 + $0x38] sm:$0xff] %vm280_vm2, %v864_v41  ;;  %v964_v40 = vld [vmem:[#allocation2] sm:$0xff] }
 0x30a   : > { %v1047_v56 = vsel %vm1029_vm15, %v1039_v19, 0.0  ;;  %v797_v20 = vpop.xlane.xlu0 %796  ;;  %vm1016_vm15 = vcmp.lt.s32.totalorder %v1992_v14, 16 }
 0x30b   : > { %v1417_v32 = vpop.eup %1416  ;;  %1055 = vst.msk [vmem:[%s2097_s11 + $0x8] sm:$0xff] %vm280_vm2, %v1047_v56  ;;  %v975_v44 = vsub.f32 %v955_v9, %v967_v43  ;;  %v810_v4 = vadd.f32 %v797_v20, %v786_v35  ;;  %vm1032_vm4 = vmand %vm1016_vm15, %vm1024_vm1 }
 0x30c   : > { %v1419_v28 = vpop.eup %1418  ;;  %v995_v51 = vmul.f32 0.6931472, %v1417_v32  ;;  %v980_v61 = vld [vmem:[#allocation3] sm:$0xff]  ;;  %v945_v57 = vld [vmem:[#allocation4 + $0x28] sm:$0xff] }
 0x30d   : > { %1426 = vlog2.f32 %v980_v61  ;;  %v959_v30 = vmul.f32 %v1415_v7, %v945_v57  ;;  %819 = vst.msk [vmem:[#allocation3 + $0x10] sm:$0xff] %vm280_vm2, %v810_v4  ;;  %v1421_v5 = vpop.eup %1420  ;;  %v999_v11 = vmul.f32 0.6931472, %v1419_v28  ;;  %v831_v7 = vld [vmem:[#allocation4 + $0x30] sm:$0xff] }
 0x30e   : > { %v1007_v12 = vsub.f32 %v975_v44, %v995_v51  ;;  %v805_v1 = vpop.xlane.xlu0 %804  ;;  %1428 = vrcp.f32 %v934_v6  ;;  %v966_v28 = vld [vmem:[#allocation2 + $0x10] sm:$0xff] }
 0x30f   : > { %v977_v48 = vsub.f32 %v959_v30, %v969_v2  ;;  %v814_v45 = vadd.f32 %v805_v1, %v790_v37  ;;  %v1423_v23 = vpop.eup %1422  ;;  %1430 = vrcp.f32 %v936_v16  ;;  %v968_v2 = vld [vmem:[#allocation2 + $0x20] sm:$0xff] }
 0x310   : > { %v1041_v33 = vmul.f32 %v2087_v52, %v1007_v12  ;;  %v947_v42 = vld [vmem:[#allocation4 + $0x38] sm:$0xff]  ;;  %v1425_v3 = vpop.eup %1424  ;;  %v1003_v55 = vmul.f32 0.6931472, %v1423_v23  ;;  %v984_v54 = vld [vmem:[#allocation3 + $0x20] sm:$0xff] }
 0x311   : > { %v1009_v29 = vsub.f32 %v977_v48, %v999_v11  ;;  %v963_v36 = vmul.f32 %v1421_v5, %v947_v42  ;;  %823 = vst.msk [vmem:[#allocation3 + $0x30] sm:$0xff] %vm280_vm2, %v814_v45  ;;  %v949_v8 = vmul.f32 %v1425_v3, %v940_v63 }
 0x312   : > { %v1049_v18 = vsel %vm1031_vm5, %v1041_v33, 0.0  ;;  %v846_v38 = vpop.xlane.xlu0 %845  ;;  %vm1018_vm5 = vcmp.lt.s32.totalorder %v1999_v24, 16 }
 0x313   : > { %1057 = vst.msk [vmem:[%s2097_s11 + $0x18] sm:$0xff] %vm280_vm2, %v1049_v18  ;;  %v1043_v0 = vmul.f32 %v2087_v52, %v1009_v29  ;;  %v979_v46 = vsub.f32 %v963_v36, %v971_v39  ;;  %v859_v50 = vadd.f32 %v846_v38, %v827_v49  ;;  %v972_v31 = vsub.f32 %v949_v8, %v964_v40  ;;  %vm1034_vm7 = vmand %vm1018_vm5, %vm1026_vm6 }
 0x314   : > { %v982_v15 = vld [vmem:[#allocation3 + $0x10] sm:$0xff] }
 0x315   : > { %v1051_v47 = vsel %vm1033_vm8, %v1043_v0, 0.0  ;;  %v1011_v41 = vsub.f32 %v979_v46, %v1003_v55  ;;  %1432 = vlog2.f32 %v982_v15  ;;  %867 = vst.msk [vmem:[#allocation4 + $0x10] sm:$0xff] %vm280_vm2, %v859_v50 }
 0x316   : > { %1059 = vst.msk [vmem:[%s2097_s11 + $0x28] sm:$0xff] %vm280_vm2, %v1051_v47  ;;  %1434 = vlog2.f32 %v984_v54  ;;  %v850_v53 = vpop.xlane.xlu0 %849 }
 0x317   : > { %v1427_v13 = vpop.eup %1426  ;;  %v1045_v19 = vmul.f32 %v2087_v52, %v1011_v41  ;;  %v861_v26 = vadd.f32 %v850_v53, %v829_v21  ;;  %1436 = vrcp.f32 %v938_v60 }
 0x318   : > { %v989_v9 = vmul.f32 0.6931472, %v1427_v13  ;;  %v986_v35 = vld [vmem:[#allocation3 + $0x30] sm:$0xff]  ;;  %v1429_v20 = vpop.eup %1428 }
 0x319   : > { %v1053_v43 = vsel %vm1035_vm10, %v1045_v19, 0.0  ;;  %869 = vst.msk [vmem:[#allocation4 + $0x20] sm:$0xff] %vm280_vm2, %v861_v26  ;;  %1438 = vlog2.f32 %v986_v35  ;;  %v1431_v4 = vpop.eup %1430 }
 0x31a   : > { %v1004_v56 = vsub.f32 %v972_v31, %v989_v9  ;;  %1061 = vst.msk [vmem:[%s2097_s11 + $0x38] sm:$0xff] %vm280_vm2, %v1053_v43  ;;  %v854_v59 = vpop.xlane.xlu0 %853 }
 0x31b   : > { %v863_v25 = vadd.f32 %v854_v59, %v831_v7 }
 0x31c   : > { %v1038_v27 = vmul.f32 %v2087_v52, %v1004_v56  ;;  %v942_v32 = vld [vmem:[#allocation4 + $0x10] sm:$0xff] }
 0x31d   : > { %v953_v44 = vmul.f32 %v1429_v20, %v942_v32  ;;  %871 = vst.msk [vmem:[#allocation4 + $0x30] sm:$0xff] %vm280_vm2, %v863_v25 }
 0x31e   : > { %v1046_v17 = vsel %vm1028_vm13, %v1038_v27, 0.0 }
 0x31f   : > { %v1433_v51 = vpop.eup %1432  ;;  %1054 = vst.msk [vmem:[%s2097_s11] sm:$0xff] %vm280_vm2, %v1046_v17  ;;  %v974_v22 = vsub.f32 %v953_v44, %v966_v28 }
 0x320   : > { %v1435_v61 = vpop.eup %1434  ;;  %v993_v57 = vmul.f32 0.6931472, %v1433_v51  ;;  %v944_v30 = vld [vmem:[#allocation4 + $0x20] sm:$0xff] }
 0x321   : > { %v957_v37 = vmul.f32 %v1431_v4, %v944_v30  ;;  %v1437_v12 = vpop.eup %1436  ;;  %v997_v1 = vmul.f32 0.6931472, %v1435_v61 }
 0x322   : > { %v1006_v6 = vsub.f32 %v974_v22, %v993_v57 }
 0x323   : > { %v976_v5 = vsub.f32 %v957_v37, %v968_v2  ;;  %v1439_v11 = vpop.eup %1438 }
 0x324   : > { %v1040_v48 = vmul.f32 %v2087_v52, %v1006_v6  ;;  %v946_v45 = vld [vmem:[#allocation4 + $0x30] sm:$0xff]  ;;  %v1001_v33 = vmul.f32 0.6931472, %v1439_v11 }
 0x325   : > { %v1008_v23 = vsub.f32 %v976_v5, %v997_v1  ;;  %v961_v16 = vmul.f32 %v1437_v12, %v946_v45 }
 0x326   : > { %v1048_v10 = vsel %vm1030_vm0, %v1040_v48, 0.0 }
 0x327   : > { %1056 = vst.msk [vmem:[%s2097_s11 + $0x10] sm:$0xff] %vm280_vm2, %v1048_v10  ;;  %v1042_v42 = vmul.f32 %v2087_v52, %v1008_v23  ;;  %v978_v49 = vsub.f32 %v961_v16, %v970_v34 }
 0x329   : > { %v1050_v14 = vsel %vm1032_vm4, %v1042_v42, 0.0  ;;  %v1010_v63 = vsub.f32 %v978_v49, %v1001_v33 }
 0x32a   : > { %1058 = vst.msk [vmem:[%s2097_s11 + $0x20] sm:$0xff] %vm280_vm2, %v1050_v14 }
 0x32b   : > { %v1044_v58 = vmul.f32 %v2087_v52, %v1010_v63 }
 0x32d   : > { %v1052_v29 = vsel %vm1034_vm7, %v1044_v58, 0.0 }
 0x32e   : > { %1060 = vst.msk [vmem:[%s2097_s11 + $0x30] sm:$0xff] %vm280_vm2, %v1052_v29 }
 0x32f PF: > { %s16_s20 = sadd.s32 1, %s1481_s20   ;;  %s2185_s18 = smov %s1477_s19 }
 0x330   : > { %p13_p2 = scmp.ge.s32.totalorder %s16_s20, 4   ;;  %s2186_s19 = smov %s2188_s22 }
 0x332   :  { %15 = sbr.rel (!%p13_p2) target bundleno = 2 (0x2), region = 88 }
 0x339   :  { %1084 = vsyncpa [#allocation7], 1 }
 0x33a   :  { %1086 = vsyncpa [#allocation7 + $0x1], 1 }

</bundles_post_ra>
